<compile_context>
chip_gen: v5e
topology: v5e:2x2
jax: 0.10.0
libtpu: 0.0.40
codegen_flags: <defaults>
</compile_context>

<pallas_src>
import functools

import jax
import jax.numpy as jnp
from jax import lax
from jax.experimental import pallas as pl
from jax.experimental.pallas import tpu as pltpu


# ---------------------------------------------------------------------------
# Helpers
# ---------------------------------------------------------------------------

def _round_up(x, m):
    return ((x + m - 1) // m) * m


def _vmem_budget(frac=0.8):
    try:
        cap = pltpu.get_tpu_info().vmem_capacity_bytes
    except Exception:
        cap = 64 * 1024 * 1024          # conservative (v7x per-core VMEM)
    return int(cap * frac)


def prepare_params(raw):
    """Convert torch-layout f32 params to kernel layout:
       * weights cast to bf16 (MXU-friendly), biases kept f32,
       * uk/uv (nn.Linear, W:[out,in]) pre-transposed and fused into one
         [E, 2E] Conv1D-style weight so the image projection is one matmul."""
    bf = lambda w: jnp.asarray(w, jnp.bfloat16)
    f32 = lambda b: jnp.asarray(b, jnp.float32)
    return {
        "c_attn_w": bf(raw["c_attn_w"]), "c_attn_b": f32(raw["c_attn_b"]),
        "c_proj_w": bf(raw["c_proj_w"]), "c_proj_b": f32(raw["c_proj_b"]),
        "ukv_w": bf(jnp.concatenate([raw["uk_w"].T, raw["uv_w"].T], axis=1)),
        "ukv_b": f32(jnp.concatenate([raw["uk_b"], raw["uv_b"]])),
    }


# ---------------------------------------------------------------------------
# Matmul + bias kernel (Conv1D / fused Linear)
# ---------------------------------------------------------------------------

def _matmul_bias_kernel(x_ref, w_ref, b_ref, o_ref):
    # x_ref: [tm, K] (any dtype), w_ref: [K, tn] bf16, b_ref: [1, tn] f32
    x = x_ref[...].astype(jnp.bfloat16)
    acc = jnp.dot(x, w_ref[...], preferred_element_type=jnp.float32)
    acc = acc + b_ref[...]                      # f32 bias, broadcast over rows
    o_ref[...] = acc.astype(o_ref.dtype)


def _matmul_bias(x2d, weight, bias, *, tm_target=1024, tn_target=2048):
    """out = x2d @ weight + bias.   x2d:[M,K], weight:[K,N] (bf16), bias:[N]."""
    M, K = x2d.shape
    K2, N = weight.shape
    assert K2 == K and bias.shape == (N,)

    weight = weight.astype(jnp.bfloat16)        # no-op when pre-cast
    bias = bias.astype(jnp.float32)

    # Lane-dense output: pad N to a multiple of 128 (zeros), slice afterwards.
    n_pad = _round_up(N, 128)
    if n_pad != N:
        weight = jnp.pad(weight, ((0, 0), (0, n_pad - N)))
        bias = jnp.pad(bias, (0, n_pad - N))
    b2d = bias.reshape(1, n_pad)

    vmem_budget = _vmem_budget(0.8)
    x_item = jnp.dtype(x2d.dtype).itemsize
    o_item = x_item
    w_item = 2                                   # bf16

    # Tile N only if keeping the whole weight resident would eat too much VMEM.
    if K * n_pad * w_item <= vmem_budget // 3:
        tn = n_pad
    else:
        tn = min(tn_target, n_pad)
    grid_n = pl.cdiv(n_pad, tn)
    resident_w = grid_n == 1
    w_bufs = 1 if resident_w else 2

    # Large M tiles (~1024 rows) to amortize per-step overhead; shrink to fit.
    tm = M if M <= tm_target else tm_target

    def _est(tm_):
        return (2 * tm_ * K * x_item + 2 * tm_ * tn * o_item
                + w_bufs * (K * tn * w_item + tn * 4))

    while tm > 128 and _est(tm) > vmem_budget:
        tm = max(128, (tm // 2 // 8) * 8)
    grid = (pl.cdiv(M, tm), grid_n)

    out_shape = jax.ShapeDtypeStruct((M, n_pad), x2d.dtype)

    def _build(single_buffer_w):
        if resident_w:
            w_map = lambda i, j: (0, 0)
            b_map = lambda i, j: (0, 0)
        else:
            w_map = lambda i, j: (0, j)
            b_map = lambda i, j: (0, j)
        if single_buffer_w:
            # Constant index_map => double-buffering the weight is pure waste.
            w_spec = pl.BlockSpec((K, tn), w_map, pipeline_mode=pl.Buffered(1))
            b_spec = pl.BlockSpec((1, tn), b_map, pipeline_mode=pl.Buffered(1))
        else:
            w_spec = pl.BlockSpec((K, tn), w_map)
            b_spec = pl.BlockSpec((1, tn), b_map)
        return pl.pallas_call(
            _matmul_bias_kernel,
            out_shape=out_shape,
            grid_spec=pltpu.PrefetchScalarGridSpec(
                num_scalar_prefetch=0,
                grid=grid,
                in_specs=[
                    pl.BlockSpec((tm, K), lambda i, j: (i, 0)),   # x streamed over M
                    w_spec,                                        # weight
                    b_spec,                                        # bias
                ],
                out_specs=pl.BlockSpec((tm, tn), lambda i, j: (i, j)),
            ),
            compiler_params=pltpu.CompilerParams(
                dimension_semantics=("parallel", "parallel"),
                vmem_limit_bytes=vmem_budget,
            ),
        )

    try:
        out = _build(resident_w)(x2d, weight, b2d)
    except Exception:
        # Fallback if this JAX build rejects pipeline_mode=pl.Buffered(1).
        out = _build(False)(x2d, weight, b2d)

    if n_pad != N:
        out = out[:, :N]
    return out


def conv1d_with_trained_weights(x, weight, bias):
    """Conv1DWithTrainedWeights.forward: x @ W + b with W:[in, out]."""
    lead = x.shape[:-1]
    out2d = _matmul_bias(x.reshape(-1, x.shape[-1]), weight, bias)
    return out2d.reshape(*lead, weight.shape[-1])


# ---------------------------------------------------------------------------
# Pseudo-attention kernel (per batch, per head-block, merged output)
# ---------------------------------------------------------------------------

def _attn_kernel(mask_ref, q_ref, k_ref, v_ref, o_ref, *, scale, mask_value):
    q = q_ref[...].astype(jnp.bfloat16)        # [hb, Sq, Dh]
    k = k_ref[...].astype(jnp.bfloat16)        # [hb, Sk, Dh]
    v = v_ref[...].astype(jnp.bfloat16)        # [hb, Sk, Dh]
    mask = mask_ref[...].astype(jnp.float32)   # [sq_m, Sk]  (sq_m in {1, Sq})

    hb, sq, dh = q.shape
    sk = k.shape[1]

    # Q @ K^T contracting head_dim, batched over heads (transpose folded into
    # the MXU dot_general, no materialized K transpose).
    s = lax.dot_general(q, k, (((2,), (2,)), ((0,), (0,))),
                        preferred_element_type=jnp.float32)      # [hb, Sq, Sk]
    s = s * scale

    # Causal mask offset by (Sk - Sq): image key + past keys always visible.
    row = lax.broadcasted_iota(jnp.int32, (sq, sk), 0)
    col = lax.broadcasted_iota(jnp.int32, (sq, sk), 1)
    causal = col <= row + (sk - sq)
    s = jnp.where(causal[None], s, mask_value)
    s = s + mask[None]                         # broadcast over heads (and Sq)

    # Softmax with post-PV normalization (EUP reciprocal, approx is free-ish).
    m = jnp.max(s, axis=-1, keepdims=True)
    p = jnp.exp(s - m)                                       # unnormalized
    denom = jnp.sum(p, axis=-1, keepdims=True)               # [hb, Sq, 1]

    out = lax.dot_general(p.astype(jnp.bfloat16), v,
                          (((2,), (1,)), ((0,), (0,))),
                          preferred_element_type=jnp.float32)  # [hb, Sq, Dh]
    out = out * pl.reciprocal(denom, approx=True)

    # Merge heads in-kernel -> single lane-dense store of [Sq, hb*Dh].
    merged = jnp.concatenate([out[h] for h in range(hb)], axis=-1)
    o_ref[...] = merged.astype(o_ref.dtype)


def _pick_head_block(num_heads, sq, sk, dh, itemsize, budget):
    """Largest divisor of num_heads whose per-step VMEM estimate fits."""
    for hb in range(num_heads, 0, -1):
        if num_heads % hb:
            continue
        est = (3 * hb * sq * sk * 4                        # scores / probs f32
               + 4 * hb * (sq + 2 * sk) * dh * itemsize    # q/k/v (2 buffers)
               + 2 * sq * hb * dh * 4)                     # merged out tiles
        if est <= budget:
            return hb
    return 1


def pallas_pseudo_attention(q, k, v, attention_mask, *, mask_value=-10000.0):
    """q:[B,H,Sq,Dh], k/v:[B,H,Sk,Dh], additive mask broadcastable to
    [B,1,{1,Sq},Sk].  Returns head-merged output [B, Sq, H*Dh]."""
    B, H, Sq, Dh = q.shape
    Sk = k.shape[2]
    E = H * Dh

    # Keep the query dim of the mask at 1 when possible (no [B,Sq,Sk] in HBM).
    am = jnp.asarray(attention_mask, jnp.float32)
    if am.ndim == 4:
        sq_m = Sq if am.shape[2] == Sq else 1
        am = jnp.broadcast_to(am, (B, 1, sq_m, Sk))[:, 0]
    elif am.ndim == 3:
        sq_m = Sq if am.shape[1] == Sq else 1
        am = jnp.broadcast_to(am, (B, sq_m, Sk))
    else:
        sq_m = 1
        am = jnp.broadcast_to(am.reshape(1, 1, Sk), (B, 1, Sk))

    itemsize = jnp.dtype(q.dtype).itemsize
    hb = _pick_head_block(H, Sq, Sk, Dh, itemsize, _vmem_budget(0.6))
    grid = (B, H // hb)

    # TODO(synk): for very long prefill an Sk-tiled online-softmax (flash)
    # variant and Sk padding to a multiple of 128 would further help on v7x.
    kernel = functools.partial(_attn_kernel,
                               scale=1.0 / (Dh ** 0.5),
                               mask_value=mask_value)
    return pl.pallas_call(
        kernel,
        out_shape=jax.ShapeDtypeStruct((B, Sq, E), q.dtype),
        grid_spec=pltpu.PrefetchScalarGridSpec(
            num_scalar_prefetch=0,
            grid=grid,
            in_specs=[
                pl.BlockSpec((None, sq_m, Sk), lambda b, j: (b, 0, 0)),
                pl.BlockSpec((None, hb, Sq, Dh), lambda b, j: (b, j, 0, 0)),
                pl.BlockSpec((None, hb, Sk, Dh), lambda b, j: (b, j, 0, 0)),
                pl.BlockSpec((None, hb, Sk, Dh), lambda b, j: (b, j, 0, 0)),
            ],
            out_specs=pl.BlockSpec((None, Sq, hb * Dh), lambda b, j: (b, 0, j)),
        ),
        compiler_params=pltpu.CompilerParams(
            dimension_semantics=("parallel", "parallel"),
            vmem_limit_bytes=_vmem_budget(0.8),
        ),
    )(am, q, k, v)


# ---------------------------------------------------------------------------
# GPT2PseudoAttention forward (Pallas kernels + JAX glue)
# ---------------------------------------------------------------------------

def _split_heads(t, num_heads, head_dim):
    B, S, _ = t.shape
    return t.reshape(B, S, num_heads, head_dim).transpose(0, 2, 1, 3)


def _merge_heads(t, num_heads, head_dim):
    B, H, S, D = t.shape
    return t.transpose(0, 2, 1, 3).reshape(B, S, H * D)


def gpt2_pseudo_attention_forward(params, word_hidden_states, image_hidden_states,
                                  attention_mask, layer_past=None, use_cache=True,
                                  *, num_heads, head_dim):
    qkv = conv1d_with_trained_weights(word_hidden_states,
                                      params["c_attn_w"], params["c_attn_b"])
    q_word, k_word, v_word = jnp.split(qkv, 3, axis=2)

    if layer_past is None:
        img = image_hidden_states[:, None, :]                     # [B, 1, E]
        kv_image = conv1d_with_trained_weights(img, params["ukv_w"],
                                               params["ukv_b"])   # fused uk+uv
        k_image, v_image = jnp.split(kv_image, 2, axis=-1)
        if k_image.shape[0] != k_word.shape[0]:
            num_beams = k_word.shape[0] // k_image.shape[0]
            k_image = jnp.repeat(k_image, num_beams, axis=0)
            v_image = jnp.repeat(v_image, num_beams, axis=0)
        k_image_word = jnp.concatenate([k_image, k_word], axis=1)
        v_image_word = jnp.concatenate([v_image, v_word], axis=1)
        q = _split_heads(q_word, num_heads, head_dim)
        k = _split_heads(k_image_word, num_heads, head_dim)
        v = _split_heads(v_image_word, num_heads, head_dim)
        present = (k, v) if use_cache else None
    else:
        q = _split_heads(q_word, num_heads, head_dim)
        k_w = _split_heads(k_word, num_heads, head_dim)
        v_w = _split_heads(v_word, num_heads, head_dim)
        past_key, past_value = layer_past
        k = jnp.concatenate([past_key, k_w], axis=-2)
        v = jnp.concatenate([past_value, v_w], axis=-2)
        present = (k, v)

    # Attention kernel returns the output already head-merged: [B, Sq, E].
    attn_output = pallas_pseudo_attention(q, k, v, attention_mask)
    attn_output = conv1d_with_trained_weights(attn_output,
                                              params["c_proj_w"], params["c_proj_b"])
    # TODO(synk): attn_dropout / resid_dropout are eval-mode identities (p=0.1 train-only).
    return attn_output, present


# ---------------------------------------------------------------------------
# Pure-JAX f32 reference + test harness
# ---------------------------------------------------------------------------

def _reference_forward(raw, word, image, attention_mask, num_heads, head_dim):
    B, S, E = word.shape
    qkv = (word.reshape(-1, E) @ raw["c_attn_w"] + raw["c_attn_b"]).reshape(B, S, 3 * E)
    q_word, k_word, v_word = jnp.split(qkv, 3, axis=2)
    img = image[:, None, :]
    k_image = img @ raw["uk_w"].T + raw["uk_b"]
    v_image = img @ raw["uv_w"].T + raw["uv_b"]
    k = jnp.concatenate([k_image, k_word], axis=1)
    v = jnp.concatenate([v_image, v_word], axis=1)
    q = _split_heads(q_word, num_heads, head_dim)
    k = _split_heads(k, num_heads, head_dim)
    v = _split_heads(v, num_heads, head_dim)
    s = jnp.einsum("bhqd,bhkd->bhqk", q, k) / (head_dim ** 0.5)
    Sq, Sk = s.shape[-2], s.shape[-1]
    causal = jnp.arange(Sk)[None, :] <= (jnp.arange(Sq)[:, None] + (Sk - Sq))
    s = jnp.where(causal[None, None], s, -10000.0)
    s = s + attention_mask
    p = jax.nn.softmax(s, axis=-1)
    o = jnp.einsum("bhqk,bhkd->bhqd", p, v)
    o = _merge_heads(o, num_heads, head_dim)
    o = (o.reshape(-1, E) @ raw["c_proj_w"] + raw["c_proj_b"]).reshape(B, S, E)
    return o, (k, v)


if __name__ == "__main__":
    # Small shapes consistent with the module layout ([batch, seq, hidden]).
    batch, seq, embed_dim, num_heads = 2, 8, 32, 4
    head_dim = embed_dim // num_heads
    kv_len = seq + 1   # 1 image token + seq word tokens

    key = jax.random.PRNGKey(0)
    ks = jax.random.split(key, 10)
    word = jax.random.normal(ks[0], (batch, seq, embed_dim), jnp.float32)
    image = jax.random.normal(ks[1], (batch, embed_dim), jnp.float32)
    raw_params = {
        "c_attn_w": jax.random.normal(ks[2], (embed_dim, 3 * embed_dim), jnp.float32) * 0.02,
        "c_attn_b": jax.random.normal(ks[3], (3 * embed_dim,), jnp.float32) * 0.02,
        "c_proj_w": jax.random.normal(ks[4], (embed_dim, embed_dim), jnp.float32) * 0.02,
        "c_proj_b": jax.random.normal(ks[5], (embed_dim,), jnp.float32) * 0.02,
        "uk_w": jax.random.normal(ks[6], (embed_dim, embed_dim), jnp.float32) * 0.02,
        "uk_b": jax.random.normal(ks[7], (embed_dim,), jnp.float32) * 0.02,
        "uv_w": jax.random.normal(ks[8], (embed_dim, embed_dim), jnp.float32) * 0.02,
        "uv_b": jax.random.normal(ks[9], (embed_dim,), jnp.float32) * 0.02,
    }
    params = prepare_params(raw_params)

    # HF-style additive mask [B, 1, 1, Sk]: 0 = attend, -10000 = masked.
    attention_mask = jnp.zeros((batch, 1, 1, kv_len), jnp.float32)
    attention_mask = attention_mask.at[1, :, :, 1].set(-10000.0)

    out, present = gpt2_pseudo_attention_forward(
        params, word, image, attention_mask,
        layer_past=None, use_cache=True,
        num_heads=num_heads, head_dim=head_dim)
    out = jax.block_until_ready(out)

    ref_out, ref_present = _reference_forward(
        raw_params, word, image, attention_mask, num_heads, head_dim)

    assert out.shape == (batch, seq, embed_dim)
    # bf16 matmuls + approx reciprocal -> bf16-level tolerances.
    assert jnp.allclose(out, ref_out, atol=3e-2, rtol=3e-2), \
        float(jnp.max(jnp.abs(out - ref_out)))
    assert jnp.allclose(present[0], ref_present[0], atol=3e-2, rtol=3e-2)
    assert jnp.allclose(present[1], ref_present[1], atol=3e-2, rtol=3e-2)

    print("KERNEL_OK")
</pallas_src>

<mosaic_0001>
module attributes {stable_mosaic.version = 11 : i64} {
  func.func @_matmul_bias_kernel(%arg0: i32, %arg1: i32, %arg2: memref<16x32xf32, #tpu.memory_space<vmem>>, %arg3: memref<32x128xbf16, #tpu.memory_space<vmem>>, %arg4: memref<1x128xf32, #tpu.memory_space<vmem>>, %arg5: memref<16x128xf32, #tpu.memory_space<vmem>>) attributes {dimension_semantics = [#tpu.dimension_semantics<parallel>, #tpu.dimension_semantics<parallel>], iteration_bounds = array<i64: 1, 1>, scalar_prefetch = 0 : i64, scratch_operands = 0 : i64, tpu.core_type = #tpu.core_type<tc>, window_params = [{transform_indices = @transform_0, window_bounds = array<i64: 16, 32>}, {pipeline_mode = #tpu.pipeline_mode<synchronous>, transform_indices = @transform_1, window_bounds = array<i64: 32, 128>}, {pipeline_mode = #tpu.pipeline_mode<synchronous>, transform_indices = @transform_2, window_bounds = array<i64: 1, 128>}, {transform_indices = @transform_3, window_bounds = array<i64: 16, 128>}]} {
    %c0 = arith.constant 0 : index
    %c0_0 = arith.constant 0 : index
    %0 = vector.load %arg2[%c0, %c0_0] : memref<16x32xf32, #tpu.memory_space<vmem>>, vector<16x32xf32>
    %1 = arith.truncf %0 : vector<16x32xf32> to vector<16x32xbf16>
    %c0_1 = arith.constant 0 : index
    %c0_2 = arith.constant 0 : index
    %2 = vector.load %arg3[%c0_1, %c0_2] : memref<32x128xbf16, #tpu.memory_space<vmem>>, vector<32x128xbf16>
    %cst = arith.constant dense<0.000000e+00> : vector<16x128xf32>
    %3 = tpu.matmul %1, %2, %cst {dimension_numbers = #tpu.dot_dimension_numbers<[1], [0], [0], [1], [0, 0, 1, 1], [], []>} : vector<16x32xbf16>, vector<32x128xbf16>, vector<16x128xf32> -> vector<16x128xf32>
    %c0_3 = arith.constant 0 : index
    %c0_4 = arith.constant 0 : index
    %4 = vector.load %arg4[%c0_3, %c0_4] : memref<1x128xf32, #tpu.memory_space<vmem>>, vector<1x128xf32>
    %5 = vector.broadcast %4 : vector<1x128xf32> to vector<16x128xf32>
    %6 = arith.addf %3, %5 : vector<16x128xf32>
    %c0_5 = arith.constant 0 : index
    %c0_6 = arith.constant 0 : index
    %7 = vector.load %arg5[%c0_5, %c0_6] : memref<16x128xf32, #tpu.memory_space<vmem>>, vector<16x128xf32>
    tpu.vector_store %arg5[%c0_5, %c0_6], %6 {strides = array<i32>} : memref<16x128xf32, #tpu.memory_space<vmem>>, vector<16x128xf32>,
    return
  }
  func.func @transform_0(%arg0: i32, %arg1: i32) -> (i32, i32) {
    %c0_i32 = arith.constant 0 : i32
    %c0_i32_0 = arith.constant 0 : i32
    return %arg0, %c0_i32 : i32, i32
  }
  func.func @transform_1(%arg0: i32, %arg1: i32) -> (i32, i32) {
    %c0_i32 = arith.constant 0 : i32
    %c0_i32_0 = arith.constant 0 : i32
    %c0_i32_1 = arith.constant 0 : i32
    return %c0_i32, %c0_i32_0 : i32, i32
  }
  func.func @transform_2(%arg0: i32, %arg1: i32) -> (i32, i32) {
    %c0_i32 = arith.constant 0 : i32
    %c0_i32_0 = arith.constant 0 : i32
    %c0_i32_1 = arith.constant 0 : i32
    return %c0_i32, %c0_i32_0 : i32, i32
  }
  func.func @transform_3(%arg0: i32, %arg1: i32) -> (i32, i32) {
    %c0_i32 = arith.constant 0 : i32
    return %arg0, %arg1 : i32, i32
  }
}

module attributes {stable_mosaic.version = 11 : i64} {
  func.func @_matmul_bias_kernel(%arg0: i32, %arg1: i32, %arg2: memref<16x32xf32, #tpu.memory_space<vmem>>, %arg3: memref<32x128xbf16, #tpu.memory_space<vmem>>, %arg4: memref<1x128xf32, #tpu.memory_space<vmem>>, %arg5: memref<16x128xf32, #tpu.memory_space<vmem>>) attributes {dimension_semantics = [#tpu.dimension_semantics<parallel>, #tpu.dimension_semantics<parallel>], iteration_bounds = array<i64: 1, 1>, scalar_prefetch = 0 : i64, scratch_operands = 0 : i64, tpu.core_type = #tpu.core_type<tc>, window_params = [{transform_indices = @transform_0, window_bounds = array<i64: 16, 32>}, {pipeline_mode = #tpu.pipeline_mode<synchronous>, transform_indices = @transform_1, window_bounds = array<i64: 32, 128>}, {pipeline_mode = #tpu.pipeline_mode<synchronous>, transform_indices = @transform_2, window_bounds = array<i64: 1, 128>}, {transform_indices = @transform_3, window_bounds = array<i64: 16, 128>}]} {
    %c0 = arith.constant 0 : index
    %c0_0 = arith.constant 0 : index
    %0 = vector.load %arg2[%c0, %c0_0] : memref<16x32xf32, #tpu.memory_space<vmem>>, vector<16x32xf32>
    %1 = arith.truncf %0 : vector<16x32xf32> to vector<16x32xbf16>
    %c0_1 = arith.constant 0 : index
    %c0_2 = arith.constant 0 : index
    %2 = vector.load %arg3[%c0_1, %c0_2] : memref<32x128xbf16, #tpu.memory_space<vmem>>, vector<32x128xbf16>
    %cst = arith.constant dense<0.000000e+00> : vector<16x128xf32>
    %3 = tpu.matmul %1, %2, %cst {dimension_numbers = #tpu.dot_dimension_numbers<[1], [0], [0], [1], [0, 0, 1, 1], [], []>} : vector<16x32xbf16>, vector<32x128xbf16>, vector<16x128xf32> -> vector<16x128xf32>
    %c0_3 = arith.constant 0 : index
    %c0_4 = arith.constant 0 : index
    %4 = vector.load %arg4[%c0_3, %c0_4] : memref<1x128xf32, #tpu.memory_space<vmem>>, vector<1x128xf32>
    %5 = vector.broadcast %4 : vector<1x128xf32> to vector<16x128xf32>
    %6 = arith.addf %3, %5 : vector<16x128xf32>
    %c0_5 = arith.constant 0 : index
    %c0_6 = arith.constant 0 : index
    %7 = vector.load %arg5[%c0_5, %c0_6] : memref<16x128xf32, #tpu.memory_space<vmem>>, vector<16x128xf32>
    tpu.vector_store %arg5[%c0_5, %c0_6], %6 {strides = array<i32>} : memref<16x128xf32, #tpu.memory_space<vmem>>, vector<16x128xf32>,
    return
  }
  func.func @transform_0(%arg0: i32, %arg1: i32) -> (i32, i32) {
    %c0_i32 = arith.constant 0 : i32
    %c0_i32_0 = arith.constant 0 : i32
    return %arg0, %c0_i32 : i32, i32
  }
  func.func @transform_1(%arg0: i32, %arg1: i32) -> (i32, i32) {
    %c0_i32 = arith.constant 0 : i32
    %c0_i32_0 = arith.constant 0 : i32
    %c0_i32_1 = arith.constant 0 : i32
    return %c0_i32, %c0_i32_0 : i32, i32
  }
  func.func @transform_2(%arg0: i32, %arg1: i32) -> (i32, i32) {
    %c0_i32 = arith.constant 0 : i32
    %c0_i32_0 = arith.constant 0 : i32
    %c0_i32_1 = arith.constant 0 : i32
    return %c0_i32, %c0_i32_0 : i32, i32
  }
  func.func @transform_3(%arg0: i32, %arg1: i32) -> (i32, i32) {
    %c0_i32 = arith.constant 0 : i32
    return %arg0, %arg1 : i32, i32
  }
}

</mosaic_0001>

<bundles_post_ra>
// kernel: tpu_custom_call.1
= control target key start
LH: loop header
LB: loop body
LE: loop exit
PB: predicated region body
PF: predicated region fallthrough
CT: control target
= control target key end

     0   :  { %8 = vsyncpa [#allocation3], 0  ;;  %s253_s0 = inlined_call_operand.hbm [shape: f32[16,32], index: 0, kind: input, shape index: {}]   ;;  %s254_s1 = inlined_call_operand.hbm [shape: bf16[32,128], index: 1, kind: input, shape index: {}]   ;;  %s255_s2 = inlined_call_operand.vmem [shape: f32[1,128], index: 2, kind: input, shape index: {}]   ;;  %s256_s3 = inlined_call_operand.hbm [shape: f32[16,128], index: 3, kind: output, shape index: {}]  }
   0x1   :  { %9 = vsyncpa [#allocation6], 0 }
   0x2   :  { %10 = vsyncpa [#allocation4], 0  ;;  %s15_s14 = sshll.u32 %s253_s0, 4  ;;  %s208_s15 = smov [#allocation2]   ;;  %s16_s14 = int_to_ptr.hbm [resolvable:$true] %s15_s14 }
   0x3   :  { %s17_s16 = sshll.u32 %s208_s15, 4  ;;  %s28_s19 = sshll.u32 %s254_s1, 4  ;;  %s18_s16 = int_to_ptr.vmem [resolvable:$true] %s17_s16  ;;  %s29_s19 = int_to_ptr.hbm [resolvable:$true] %s28_s19 }
   0x4   :  { %s209_s20 = smov 128   ;;  %s210_s21 = smov 8  }
   0x5   :  { %23 = dma.hbm_to_vmem [thread:$0]  %s16_s14, 256, %s18_s16, [#allocation3], %s209_s20, %s209_s20, %s210_s21  }
   0x6   :  { %s211_s22 = smov [#allocation5]   ;;  %s212_s24 = smov 64  }
   0x7   :  { %s30_s23 = sshll.u32 %s211_s22, 4  ;;  %s213_s0 = smov 4   ;;  %s31_s23 = int_to_ptr.vmem [resolvable:$true] %s30_s23 }
   0x8   :  { %36 = dma.hbm_to_vmem [thread:$0]  %s29_s19, 256, %s31_s23, [#allocation6], %s212_s24, %s212_s24, %s213_s0  }
   0x9   :  { %202 = dma.done.wait [#allocation3], 256  }
   0xa   :  { %203 = vsyncadd [#allocation3], 4294967040 }
   0xb   :  { %204 = dma.done.wait [#allocation6], 256  }
   0xc   :  { %205 = vsyncadd [#allocation6], 4294967040  ;;  %v121_v0 = vld [vmem:[#allocation5 + $0x8] sm:$0xff]  ;;  %v120_v1 = vld [vmem:[#allocation5] sm:$0xff]  ;;  %vm71_vm0 = vcmask 261120   ;;  %s214_s26 = smov [#allocation7]  }
   0xd   :  { %81 = vmatpush.bf16.msra.mxu0 %v121_v0  ;;  %v48_v2 = vld [vmem:[#allocation2] sm:$0xff]  ;;  %v49_v3 = vld [vmem:[#allocation2 + $0x8] sm:$0xff]  ;;  %s95_s27 = sshll.u32 %s214_s26, 4  ;;  %s97_s30 = sshll.u32 %s256_s3, 4  ;;  %s96_s27 = int_to_ptr.vmem [resolvable:$true] %s95_s27  ;;  %s98_s30 = int_to_ptr.hbm [resolvable:$true] %s97_s30 }
   0xe   :  { %v50_v4 = vpack.c.bf16 %v49_v3, %v48_v2  ;;  %v129_v5 = vld [vmem:[%s255_s2] ss:$0 sm:$0xff] }
  0x11   :  { %82 = vmatpush.bf16.msra.mxu0 %v120_v1 }
  0x14   :  { %119 = vmatmul.msk.bf16.vlgmr.msra.gmra.mxu0 %vm71_vm0, %v50_v4 }
  0x91   :  { %v84_v6 = vpop.f32.mrf.mxu0 }
  0x92   :  { %v85_v7 = vadd.f32 %v129_v5, %v84_v6 }
  0x94   :  { %89 = vst [vmem:[#allocation7] sm:$0xff] %v85_v7 }
  0x99   :  { %v86_v8 = vpop.f32.mrf.mxu0 }
  0x9a   :  { %v87_v9 = vadd.f32 %v129_v5, %v86_v8 }
  0x9c   :  { %90 = vst [vmem:[#allocation7 + $0x8] sm:$0xff] %v87_v9 }
  0x9d   :  { %103 = dma.vmem_to_hbm [thread:$0]  %s96_s27, 256, %s98_s30, [#allocation4], %s209_s20, %s209_s20, %s210_s21  }
  0x9e   :  { %206 = dma.done.wait [#allocation4], 256  }
  0x9f   :  { %207 = vsyncadd [#allocation4], 4294967040 }
  0xa0   :  { %108 = vsyncpa [#allocation3], 1 }
  0xa1   :  { %109 = vsyncpa [#allocation6], 1 }
  0xa2   :  { %110 = vsyncpa [#allocation4], 1 }

// kernel: tpu_custom_call.1
= control target key start
LH: loop header
LB: loop body
LE: loop exit
PB: predicated region body
PF: predicated region fallthrough
CT: control target
= control target key end

     0   :  { %8 = vsyncpa [#allocation3], 0  ;;  %s253_s0 = inlined_call_operand.hbm [shape: f32[16,32], index: 0, kind: input, shape index: {}]   ;;  %s254_s1 = inlined_call_operand.hbm [shape: bf16[32,128], index: 1, kind: input, shape index: {}]   ;;  %s255_s2 = inlined_call_operand.vmem [shape: f32[1,128], index: 2, kind: input, shape index: {}]   ;;  %s256_s3 = inlined_call_operand.hbm [shape: f32[16,128], index: 3, kind: output, shape index: {}]  }
   0x1   :  { %9 = vsyncpa [#allocation6], 0 }
   0x2   :  { %10 = vsyncpa [#allocation4], 0  ;;  %s15_s14 = sshll.u32 %s253_s0, 4  ;;  %s208_s15 = smov [#allocation2]   ;;  %s16_s14 = int_to_ptr.hbm [resolvable:$true] %s15_s14 }
   0x3   :  { %s17_s16 = sshll.u32 %s208_s15, 4  ;;  %s28_s19 = sshll.u32 %s254_s1, 4  ;;  %s18_s16 = int_to_ptr.vmem [resolvable:$true] %s17_s16  ;;  %s29_s19 = int_to_ptr.hbm [resolvable:$true] %s28_s19 }
   0x4   :  { %s209_s20 = smov 128   ;;  %s210_s21 = smov 8  }
   0x5   :  { %23 = dma.hbm_to_vmem [thread:$0]  %s16_s14, 256, %s18_s16, [#allocation3], %s209_s20, %s209_s20, %s210_s21  }
   0x6   :  { %s211_s22 = smov [#allocation5]   ;;  %s212_s24 = smov 64  }
   0x7   :  { %s30_s23 = sshll.u32 %s211_s22, 4  ;;  %s213_s0 = smov 4   ;;  %s31_s23 = int_to_ptr.vmem [resolvable:$true] %s30_s23 }
   0x8   :  { %36 = dma.hbm_to_vmem [thread:$0]  %s29_s19, 256, %s31_s23, [#allocation6], %s212_s24, %s212_s24, %s213_s0  }
   0x9   :  { %202 = dma.done.wait [#allocation3], 256  }
   0xa   :  { %203 = vsyncadd [#allocation3], 4294967040 }
   0xb   :  { %204 = dma.done.wait [#allocation6], 256  }
   0xc   :  { %205 = vsyncadd [#allocation6], 4294967040  ;;  %v121_v0 = vld [vmem:[#allocation5 + $0x8] sm:$0xff]  ;;  %v120_v1 = vld [vmem:[#allocation5] sm:$0xff]  ;;  %vm71_vm0 = vcmask 261120   ;;  %s214_s26 = smov [#allocation7]  }
   0xd   :  { %81 = vmatpush.bf16.msra.mxu0 %v121_v0  ;;  %v48_v2 = vld [vmem:[#allocation2] sm:$0xff]  ;;  %v49_v3 = vld [vmem:[#allocation2 + $0x8] sm:$0xff]  ;;  %s95_s27 = sshll.u32 %s214_s26, 4  ;;  %s97_s30 = sshll.u32 %s256_s3, 4  ;;  %s96_s27 = int_to_ptr.vmem [resolvable:$true] %s95_s27  ;;  %s98_s30 = int_to_ptr.hbm [resolvable:$true] %s97_s30 }
   0xe   :  { %v50_v4 = vpack.c.bf16 %v49_v3, %v48_v2  ;;  %v129_v5 = vld [vmem:[%s255_s2] ss:$0 sm:$0xff] }
  0x11   :  { %82 = vmatpush.bf16.msra.mxu0 %v120_v1 }
  0x14   :  { %119 = vmatmul.msk.bf16.vlgmr.msra.gmra.mxu0 %vm71_vm0, %v50_v4 }
  0x91   :  { %v84_v6 = vpop.f32.mrf.mxu0 }
  0x92   :  { %v85_v7 = vadd.f32 %v129_v5, %v84_v6 }
  0x94   :  { %89 = vst [vmem:[#allocation7] sm:$0xff] %v85_v7 }
  0x99   :  { %v86_v8 = vpop.f32.mrf.mxu0 }
  0x9a   :  { %v87_v9 = vadd.f32 %v129_v5, %v86_v8 }
  0x9c   :  { %90 = vst [vmem:[#allocation7 + $0x8] sm:$0xff] %v87_v9 }
  0x9d   :  { %103 = dma.vmem_to_hbm [thread:$0]  %s96_s27, 256, %s98_s30, [#allocation4], %s209_s20, %s209_s20, %s210_s21  }
  0x9e   :  { %206 = dma.done.wait [#allocation4], 256  }
  0x9f   :  { %207 = vsyncadd [#allocation4], 4294967040 }
  0xa0   :  { %108 = vsyncpa [#allocation3], 1 }
  0xa1   :  { %109 = vsyncpa [#allocation6], 1 }
  0xa2   :  { %110 = vsyncpa [#allocation4], 1 }

</bundles_post_ra>
